<compile_context>
chip_gen: v6e
topology: v6e:2x2x1
jax: 0.10.0
libtpu: 0.0.40
codegen_flags: <defaults>
</compile_context>

<pallas_src>
import functools

import jax
import jax.numpy as jnp
from jax.experimental import pallas as pl
from jax.experimental.pallas import tpu as pltpu


def _round_up(x, m):
    return (x + m - 1) // m * m


def mha_energy_kernel(q_ref, k_ref, wq_ref, bq_ref, wk_ref, bk_ref, out_ref,
                      q_proj_ref, *, n_heads, d_pad):
    """One (batch, q-tile, k-tile) grid step.

    q_ref        : [1, tq, In]      bf16
    k_ref        : [1, tk, In]      bf16
    wq_ref/wk_ref: [In, H*D_pad]    bf16  (Linear weight, transposed, D zero-padded)
    bq_ref/bk_ref: [1, H*D_pad]     f32
    out_ref      : [1, H, tq, tk]   f32
    q_proj_ref   : [tq, H*D_pad]    bf16 VMEM scratch, cached across the k axis
    """
    ki = pl.program_id(2)

    # Project the query tile for ALL heads once per (b, q-tile); reuse across k tiles.
    @pl.when(ki == 0)
    def _():
        q_all = jnp.dot(q_ref[0], wq_ref[...],
                        preferred_element_type=jnp.float32) + bq_ref[...]
        q_proj_ref[...] = q_all.astype(jnp.bfloat16)

    # Project the key tile for ALL heads (one wide MXU matmul, N = H*D_pad).
    k_all = (jnp.dot(k_ref[0], wk_ref[...],
                     preferred_element_type=jnp.float32)
             + bk_ref[...]).astype(jnp.bfloat16)

    d = d_pad
    # Static unroll over heads; every slice start is a multiple of 128 (lane-aligned).
    # TODO(synk): for large n_heads switch to lax.fori_loop + pl.ds(pl.multiple_of(h*d,128), d)
    #             to bound vreg live ranges.
    for h in range(n_heads):
        q_h = q_proj_ref[:, h * d:(h + 1) * d]      # [tq, D_pad] bf16
        k_h = k_all[:, h * d:(h + 1) * d]           # [tk, D_pad] bf16
        # Contract over D_pad directly (no explicit K transpose materialized).
        energy_h = jax.lax.dot_general(
            q_h, k_h,
            dimension_numbers=(((1,), (1,)), ((), ())),
            preferred_element_type=jnp.float32)     # [tq, tk]
        out_ref[0, h] = energy_h                    # lane-dense store (tk % 128 == 0)


def multi_head_attention(query, key, value, wq, bq, wk, bk, n_heads, hid_dim,
                         mask=None):
    """JAX wrapper replicating MultiHeadAttention.forward (mask=None path).

    query, key : [B, L, input_dim]   (value unused, as in the PyTorch module)
    wq, wk     : [H*D, input_dim]    (PyTorch nn.Linear weight layout)
    bq, bk     : [H*D]
    returns    : energy [B, H, Lq, Lk]  (float32)
    """
    del value  # unused by the reference module
    assert mask is None  # TODO(synk): masked_fill path not lowered

    B, Lq, In = query.shape
    _, Lk, _ = key.shape
    H, D = n_heads, hid_dim

    # ---------------- padding / tiling ----------------
    D_pad = _round_up(D, 128)            # lane-aligned per-head slices
    HDp = H * D_pad
    tq = min(_round_up(Lq, 16), 256)     # sublane-friendly (bf16 packs 16 rows)
    Lq_pad = _round_up(Lq, tq)
    tk = min(_round_up(Lk, 128), 512)    # lane-dense output tiles
    Lk_pad = _round_up(Lk, tk)

    # ---------------- operand prep (free layout changes, done once) ----------------
    q_p = jnp.pad(query, ((0, 0), (0, Lq_pad - Lq), (0, 0))).astype(jnp.bfloat16)
    k_p = jnp.pad(key, ((0, 0), (0, Lk_pad - Lk), (0, 0))).astype(jnp.bfloat16)

    def prep_w(w, b):
        w3 = jnp.pad(w.reshape(H, D, In), ((0, 0), (0, D_pad - D), (0, 0)))
        w_t = w3.reshape(HDp, In).T.astype(jnp.bfloat16)             # [In, H*D_pad]
        b2 = jnp.pad(b.reshape(H, D), ((0, 0), (0, D_pad - D)))
        return w_t, b2.reshape(1, HDp).astype(jnp.float32)

    wq_t, bq_2d = prep_w(wq, bq)
    wk_t, bk_2d = prep_w(wk, bk)

    grid = (B, Lq_pad // tq, Lk_pad // tk)

    # VMEM budget: double-buffered pipeline blocks + scratch, 2x headroom, <= 64 MiB (v7x).
    est = (2 * tq * In * 2 + 2 * tk * In * 2          # q / k tiles (bf16)
           + 2 * 2 * In * HDp * 2                      # Wq^T, Wk^T (bf16, double-buffered)
           + 2 * 2 * HDp * 4                           # biases (f32)
           + 2 * H * tq * tk * 4                       # output tile (f32)
           + tq * HDp * 2)                             # Q-projection scratch (bf16)
    vmem_limit = int(min(max(2 * est, 32 * 1024 * 1024), 64 * 1024 * 1024))

    kernel = functools.partial(mha_energy_kernel, n_heads=H, d_pad=D_pad)

    energy_full = pl.pallas_call(
        kernel,
        out_shape=jax.ShapeDtypeStruct((B, H, Lq_pad, Lk_pad), jnp.float32),
        grid_spec=pltpu.PrefetchScalarGridSpec(
            num_scalar_prefetch=0,
            grid=grid,
            in_specs=[
                pl.BlockSpec((1, tq, In), lambda b, qi, ki: (b, qi, 0)),  # query
                pl.BlockSpec((1, tk, In), lambda b, qi, ki: (b, ki, 0)),  # key
                pl.BlockSpec((In, HDp), lambda b, qi, ki: (0, 0)),        # Wq^T
                pl.BlockSpec((1, HDp), lambda b, qi, ki: (0, 0)),         # bq
                pl.BlockSpec((In, HDp), lambda b, qi, ki: (0, 0)),        # Wk^T
                pl.BlockSpec((1, HDp), lambda b, qi, ki: (0, 0)),         # bk
            ],
            out_specs=pl.BlockSpec((1, H, tq, tk),
                                   lambda b, qi, ki: (b, 0, qi, ki)),
            scratch_shapes=[pltpu.VMEM((tq, HDp), jnp.bfloat16)],
        ),
        compiler_params=pltpu.CompilerParams(
            dimension_semantics=("parallel", "parallel", "arbitrary"),
            vmem_limit_bytes=vmem_limit),
    )(q_p, k_p, wq_t, bq_2d, wk_t, bk_2d)

    # Slice off Lq/Lk padding (done outside the kernel; padded rows/cols are discarded).
    return energy_full[:, :, :Lq, :Lk]


def reference(query, key, wq, bq, wk, bk, n_heads, hid_dim):
    """Pure-JAX f32 replica of the PyTorch forward for correctness checking."""
    B = query.shape[0]
    Q = query @ wq.T + bq
    K = key @ wk.T + bk
    Q = Q.reshape(B, -1, n_heads, hid_dim).transpose(0, 2, 1, 3)
    K = K.reshape(B, -1, n_heads, hid_dim).transpose(0, 2, 1, 3)
    return jnp.einsum("bhqd,bhkd->bhqk", Q, K)


if __name__ == "__main__":
    # Small deterministic shapes consistent with the module.
    B, L, input_dim = 2, 8, 32
    n_heads, hid_dim = 2, 16

    key0 = jax.random.PRNGKey(0)
    k1, k2, k3, k4, k5, k6, k7 = jax.random.split(key0, 7)

    query = jax.random.normal(k1, (B, L, input_dim), dtype=jnp.float32)
    key_in = jax.random.normal(k2, (B, L, input_dim), dtype=jnp.float32)
    value = jax.random.normal(k3, (B, L, input_dim), dtype=jnp.float32)  # unused

    # Deterministic parameter init (nn.Linear-style uniform bound).
    bound = 1.0 / (input_dim ** 0.5)
    wq = jax.random.uniform(k4, (n_heads * hid_dim, input_dim),
                            minval=-bound, maxval=bound, dtype=jnp.float32)
    bq = jax.random.uniform(k5, (n_heads * hid_dim,),
                            minval=-bound, maxval=bound, dtype=jnp.float32)
    wk = jax.random.uniform(k6, (n_heads * hid_dim, input_dim),
                            minval=-bound, maxval=bound, dtype=jnp.float32)
    bk = jax.random.uniform(k7, (n_heads * hid_dim,),
                            minval=-bound, maxval=bound, dtype=jnp.float32)

    energy = multi_head_attention(query, key_in, value, wq, bq, wk, bk,
                                  n_heads, hid_dim)
    energy = jax.block_until_ready(energy)

    ref = reference(query, key_in, wq, bq, wk, bk, n_heads, hid_dim)
    assert energy.shape == (B, n_heads, L, L)

    # bf16 MXU operands with f32 accumulation: compare relative to the output scale.
    max_err = float(jnp.max(jnp.abs(energy - ref)))
    scale = float(jnp.max(jnp.abs(ref)))
    assert max_err <= 5e-2 * max(1.0, scale), (max_err, scale)

    print("KERNEL_OK")
</pallas_src>

<mosaic_0001>
module attributes {stable_mosaic.version = 11 : i64} {
  func.func @mha_energy_kernel(%arg0: i32, %arg1: i32, %arg2: i32, %arg3: memref<1x16x32xbf16, #tpu.memory_space<vmem>>, %arg4: memref<1x128x32xbf16, #tpu.memory_space<vmem>>, %arg5: memref<32x256xbf16, #tpu.memory_space<vmem>>, %arg6: memref<1x256xf32, #tpu.memory_space<vmem>>, %arg7: memref<32x256xbf16, #tpu.memory_space<vmem>>, %arg8: memref<1x256xf32, #tpu.memory_space<vmem>>, %arg9: memref<1x2x16x128xf32, #tpu.memory_space<vmem>>, %arg10: memref<16x256xbf16, #tpu.memory_space<vmem>>) attributes {dimension_semantics = [#tpu.dimension_semantics<parallel>, #tpu.dimension_semantics<parallel>, #tpu.dimension_semantics<arbitrary>], iteration_bounds = array<i64: 2, 1, 1>, scalar_prefetch = 0 : i64, scratch_operands = 1 : i64, tpu.core_type = #tpu.core_type<tc>, window_params = [{transform_indices = @transform_0, window_bounds = array<i64: 1, 16, 32>}, {transform_indices = @transform_1, window_bounds = array<i64: 1, 128, 32>}, {pipeline_mode = #tpu.pipeline_mode<synchronous>, transform_indices = @transform_2, window_bounds = array<i64: 32, 256>}, {pipeline_mode = #tpu.pipeline_mode<synchronous>, transform_indices = @transform_3, window_bounds = array<i64: 1, 256>}, {pipeline_mode = #tpu.pipeline_mode<synchronous>, transform_indices = @transform_4, window_bounds = array<i64: 32, 256>}, {pipeline_mode = #tpu.pipeline_mode<synchronous>, transform_indices = @transform_5, window_bounds = array<i64: 1, 256>}, {transform_indices = @transform_6, window_bounds = array<i64: 1, 2, 16, 128>}]} {
    %c0_i32 = arith.constant 0 : i32
    %0 = arith.cmpi eq, %arg2, %c0_i32 : i32
    %1 = arith.extui %0 : i1 to i32
    %c0_i32_0 = arith.constant 0 : i32
    %2 = arith.cmpi ne, %1, %c0_i32_0 : i32
    scf.if %2 {
      %c0_19 = arith.constant 0 : index
      %c0_20 = arith.constant 0 : index
      %c0_21 = arith.constant 0 : index
      %23 = vector.load %arg3[%c0_19, %c0_20, %c0_21] : memref<1x16x32xbf16, #tpu.memory_space<vmem>>, vector<1x16x32xbf16>
      %24 = vector.shape_cast %23 : vector<1x16x32xbf16> to vector<16x32xbf16>
      %c0_22 = arith.constant 0 : index
      %c0_23 = arith.constant 0 : index
      %25 = vector.load %arg5[%c0_22, %c0_23] : memref<32x256xbf16, #tpu.memory_space<vmem>>, vector<32x256xbf16>
      %cst_24 = arith.constant dense<0.000000e+00> : vector<16x256xf32>
      %26 = tpu.matmul %24, %25, %cst_24 {dimension_numbers = #tpu.dot_dimension_numbers<[1], [0], [0], [1], [0, 0, 1, 1], [], []>} : vector<16x32xbf16>, vector<32x256xbf16>, vector<16x256xf32> -> vector<16x256xf32>
      %c0_25 = arith.constant 0 : index
      %c0_26 = arith.constant 0 : index
      %27 = vector.load %arg6[%c0_25, %c0_26] : memref<1x256xf32, #tpu.memory_space<vmem>>, vector<1x256xf32>
      %28 = vector.broadcast %27 : vector<1x256xf32> to vector<16x256xf32>
      %29 = arith.addf %26, %28 : vector<16x256xf32>
      %30 = arith.truncf %29 : vector<16x256xf32> to vector<16x256xbf16>
      %c0_27 = arith.constant 0 : index
      %c0_28 = arith.constant 0 : index
      %31 = vector.load %arg10[%c0_27, %c0_28] : memref<16x256xbf16, #tpu.memory_space<vmem>>, vector<16x256xbf16>
      tpu.vector_store %arg10[%c0_27, %c0_28], %30 {strides = array<i32>} : memref<16x256xbf16, #tpu.memory_space<vmem>>, vector<16x256xbf16>,
    } else {
    }
    %c0 = arith.constant 0 : index
    %c0_1 = arith.constant 0 : index
    %c0_2 = arith.constant 0 : index
    %3 = vector.load %arg4[%c0, %c0_1, %c0_2] : memref<1x128x32xbf16, #tpu.memory_space<vmem>>, vector<1x128x32xbf16>
    %4 = vector.shape_cast %3 : vector<1x128x32xbf16> to vector<128x32xbf16>
    %c0_3 = arith.constant 0 : index
    %c0_4 = arith.constant 0 : index
    %5 = vector.load %arg7[%c0_3, %c0_4] : memref<32x256xbf16, #tpu.memory_space<vmem>>, vector<32x256xbf16>
    %cst = arith.constant dense<0.000000e+00> : vector<128x256xf32>
    %6 = tpu.matmul %4, %5, %cst {dimension_numbers = #tpu.dot_dimension_numbers<[1], [0], [0], [1], [0, 0, 1, 1], [], []>} : vector<128x32xbf16>, vector<32x256xbf16>, vector<128x256xf32> -> vector<128x256xf32>
    %c0_5 = arith.constant 0 : index
    %c0_6 = arith.constant 0 : index
    %7 = vector.load %arg8[%c0_5, %c0_6] : memref<1x256xf32, #tpu.memory_space<vmem>>, vector<1x256xf32>
    %8 = vector.broadcast %7 : vector<1x256xf32> to vector<128x256xf32>
    %9 = arith.addf %6, %8 : vector<128x256xf32>
    %10 = arith.truncf %9 : vector<128x256xf32> to vector<128x256xbf16>
    %c0_7 = arith.constant 0 : index
    %c0_8 = arith.constant 0 : index
    %11 = vector.load %arg10[%c0_7, %c0_8] : memref<16x256xbf16, #tpu.memory_space<vmem>>, vector<16x128xbf16>
    %12 = vector.extract_strided_slice %10 {offsets = [0, 0], sizes = [128, 128], strides = [1, 1]} : vector<128x256xbf16> to vector<128x128xbf16>
    %cst_9 = arith.constant dense<0.000000e+00> : vector<16x128xf32>
    %13 = tpu.matmul %11, %12, %cst_9 {dimension_numbers = #tpu.dot_dimension_numbers<[1], [1], [0], [0], [0, 0, 1, 0], [], []>} : vector<16x128xbf16>, vector<128x128xbf16>, vector<16x128xf32> -> vector<16x128xf32>
    %c0_10 = arith.constant 0 : index
    %c0_11 = arith.constant 0 : index
    %c0_12 = arith.constant 0 : index
    %c0_13 = arith.constant 0 : index
    %14 = vector.load %arg9[%c0_10, %c0_11, %c0_12, %c0_13] : memref<1x2x16x128xf32, #tpu.memory_space<vmem>>, vector<1x1x16x128xf32>
    %15 = vector.shape_cast %14 : vector<1x1x16x128xf32> to vector<16x128xf32>
    %16 = vector.shape_cast %13 : vector<16x128xf32> to vector<1x1x16x128xf32>
    tpu.vector_store %arg9[%c0_10, %c0_11, %c0_12, %c0_13], %16 {strides = array<i32>} : memref<1x2x16x128xf32, #tpu.memory_space<vmem>>, vector<1x1x16x128xf32>,
    %c0_14 = arith.constant 0 : index
    %c128 = arith.constant 128 : index
    %17 = vector.load %arg10[%c0_14, %c128] : memref<16x256xbf16, #tpu.memory_space<vmem>>, vector<16x128xbf16>
    %18 = vector.extract_strided_slice %10 {offsets = [0, 128], sizes = [128, 128], strides = [1, 1]} : vector<128x256xbf16> to vector<128x128xbf16>
    %cst_15 = arith.constant dense<0.000000e+00> : vector<16x128xf32>
    %19 = tpu.matmul %17, %18, %cst_15 {dimension_numbers = #tpu.dot_dimension_numbers<[1], [1], [0], [0], [0, 0, 1, 0], [], []>} : vector<16x128xbf16>, vector<128x128xbf16>, vector<16x128xf32> -> vector<16x128xf32>
    %c0_16 = arith.constant 0 : index
    %c1 = arith.constant 1 : index
    %c0_17 = arith.constant 0 : index
    %c0_18 = arith.constant 0 : index
    %20 = vector.load %arg9[%c0_16, %c1, %c0_17, %c0_18] : memref<1x2x16x128xf32, #tpu.memory_space<vmem>>, vector<1x1x16x128xf32>
    %21 = vector.shape_cast %20 : vector<1x1x16x128xf32> to vector<16x128xf32>
    %22 = vector.shape_cast %19 : vector<16x128xf32> to vector<1x1x16x128xf32>
    tpu.vector_store %arg9[%c0_16, %c1, %c0_17, %c0_18], %22 {strides = array<i32>} : memref<1x2x16x128xf32, #tpu.memory_space<vmem>>, vector<1x1x16x128xf32>,
    return
  }
  func.func @transform_0(%arg0: i32, %arg1: i32, %arg2: i32) -> (i32, i32, i32) {
    %c0_i32 = arith.constant 0 : i32
    %c0_i32_0 = arith.constant 0 : i32
    return %arg0, %arg1, %c0_i32 : i32, i32, i32
  }
  func.func @transform_1(%arg0: i32, %arg1: i32, %arg2: i32) -> (i32, i32, i32) {
    %c0_i32 = arith.constant 0 : i32
    %c0_i32_0 = arith.constant 0 : i32
    return %arg0, %arg2, %c0_i32 : i32, i32, i32
  }
  func.func @transform_2(%arg0: i32, %arg1: i32, %arg2: i32) -> (i32, i32) {
    %c0_i32 = arith.constant 0 : i32
    %c0_i32_0 = arith.constant 0 : i32
    %c0_i32_1 = arith.constant 0 : i32
    return %c0_i32, %c0_i32_0 : i32, i32
  }
  func.func @transform_3(%arg0: i32, %arg1: i32, %arg2: i32) -> (i32, i32) {
    %c0_i32 = arith.constant 0 : i32
    %c0_i32_0 = arith.constant 0 : i32
    %c0_i32_1 = arith.constant 0 : i32
    return %c0_i32, %c0_i32_0 : i32, i32
  }
  func.func @transform_4(%arg0: i32, %arg1: i32, %arg2: i32) -> (i32, i32) {
    %c0_i32 = arith.constant 0 : i32
    %c0_i32_0 = arith.constant 0 : i32
    %c0_i32_1 = arith.constant 0 : i32
    return %c0_i32, %c0_i32_0 : i32, i32
  }
  func.func @transform_5(%arg0: i32, %arg1: i32, %arg2: i32) -> (i32, i32) {
    %c0_i32 = arith.constant 0 : i32
    %c0_i32_0 = arith.constant 0 : i32
    %c0_i32_1 = arith.constant 0 : i32
    return %c0_i32, %c0_i32_0 : i32, i32
  }
  func.func @transform_6(%arg0: i32, %arg1: i32, %arg2: i32) -> (i32, i32, i32, i32) {
    %c0_i32 = arith.constant 0 : i32
    %c0_i32_0 = arith.constant 0 : i32
    return %arg0, %c0_i32, %arg1, %arg2 : i32, i32, i32, i32
  }
}

</mosaic_0001>

<bundles_post_ra>
// kernel: tpu_custom_call.1
= control target key start
LH: loop header
LB: loop body
LE: loop exit
PB: predicated region body
PF: predicated region fallthrough
CT: control target
= control target key end

     0   :  { %11 = vsyncpa [#allocation4], 0  ;;  %s1491_s0 = inlined_call_operand.vmem [shape: bf16[2,16,32], index: 0, kind: input, shape index: {}]   ;;  %s1492_s1 = inlined_call_operand.vmem [shape: bf16[2,128,32], index: 1, kind: input, shape index: {}]   ;;  %s1493_s2 = inlined_call_operand.vmem [shape: bf16[32,256], index: 2, kind: input, shape index: {}]   ;;  %s1494_s3 = inlined_call_operand.vmem [shape: f32[1,256], index: 3, kind: input, shape index: {}]   ;;  %s1495_s4 = inlined_call_operand.vmem [shape: bf16[32,256], index: 4, kind: input, shape index: {}]   ;;  %s1496_s5 = inlined_call_operand.vmem [shape: f32[1,256], index: 5, kind: input, shape index: {}]   ;;  %s1497_s6 = inlined_call_operand.hbm [shape: f32[2,2,16,128], index: 6, kind: output, shape index: {}]  }
   0x1   :  { %13 = vsyncpa [#allocation4 + $0x1], 0  ;;  %s1214_s21 = smov 0   ;;  %s1216_s22 = smov 0  }
   0x2   :  { %s1218_s23 = smov 0   ;;  %s1220_s24 = smov 0  }
   0x3   :  { %s1222_s25 = smov 0   ;;  %s1224_s26 = smov 0  }
   0x4 LB: > { %s902_s27 = sadd.s32 4294967295, %s1171_s26   ;;  %s903_s28 = sadd.s32 4294967294, %s1171_s26   ;;  %s1171_s26 = sphi %s1224_s26, %s19_s26   ;;  %s1167_s25 = sphi %s1222_s25, %s1504_s25   ;;  %s1163_s24 = sphi %s1220_s24, %s1503_s24   ;;  %s1159_s23 = sphi %s1218_s23, %s1502_s23   ;;  %s1155_s22 = sphi %s1216_s22, %s1501_s22   ;;  %s1151_s21 = sphi %s1214_s21, %s1500_s21  }
   0x5   : > { %s38_s29 = sadd.s32 1, %s1167_s25  ;;  %s189_s30 = sadd.s32 1, %s1159_s23 }
   0x6   : > { %p40_p0 = scmp.ge.s32.totalorder %s38_s29, 2  ;;  %p199_p1 = scmp.ne.s32.totalorder %s1159_s23, %s1155_s22 }
   0x7   : > { %p200_p2 = scmp.eq.s32.totalorder %s902_s27, 1  ;;  %p205_p3 = scmp.ne.s32.totalorder %s1155_s22, %s1151_s21 }
   0x8   : > { %s1506_s29 = smov (%p40_p0, %s38_s29), 0  ;;  %p206_p5 = scmp.eq.s32.totalorder %s903_s28, 1 }
   0x9   : > { %p1254_p4 = por %p200_p2, %p199_p1  ;;  %s182_s8 = ssub.s32 %s1167_s25, %s1506_s29 }
   0xa   : > { %p906_p6 = scmp.ge.s32.totalorder %s1171_s26, 1  ;;  %p187_p7 = scmp.eq.s32.totalorder %s182_s8, 0 }
   0xb   : > { %p1261_p8 = por %p206_p5, %p205_p3  ;;  %p262_p9 = scmp.lt.s32.totalorder %s1171_s26, 3 }
   0xc   : > { %s1267_s10 = scalar_select %p187_p7, %s1159_s23, %s189_s30  }
   0xd   : > { %p263_p10 = pnand %p906_p6, %p262_p9 }
   0xe   : > { %p306_p11 = scmp.lt.s32.totalorder (!%p263_p10), %s1163_s24, 1  ;;  %s302_s12 = sand.u32 (!%p263_p10), 1, %s1155_s22  }
   0xf   : > { %266 = sbr.rel (%p263_p10) target bundleno = 564 (0x234), region = 44  ;;  %s907_s13 = sshll.u32 (!%p263_p10), %s302_s12, 5 }
  0x10   : > { %s304_s14 = scalar_lea.vmem (!%p263_p10), [#allocation3], %s907_s13  ;;  %s953_s16 = sshll.u32 (!%p263_p10), %s1163_s24, 9 }
  0x11   : > { %s1444_s20 = scalar_lea.hbm (!%p263_p10), %s1497_s6, %s953_s16 }
  0x14   : > { %v1072_v0 = vld [vmem:[%s1495_s4 + $0x14] ss:$8 sps:$4 sm:$0xff]   ;;  %v1074_v1 = vld [vmem:[%s1495_s4 + $0x10] ss:$8 sps:$4 sm:$0xff]   ;;  %v1173_v2 = vmov 0   ;;  %s307_s19 = scalar_select %p306_p11, %s1163_s24, 1  ;;  %v339_v19 = vlaneseq }
  0x15   : > { %584 = vmatprep.mubr.bf16.mxu1 %v1173_v2  ;;  %410 = vmatprep.mubr.bf16.mxu0 %v1173_v2  ;;  %v1075_v3 = vld [vmem:[%s1495_s4 + $0x4] ss:$8 sps:$4 sm:$0xff]   ;;  %v1077_v4 = vld [vmem:[%s1495_s4] ss:$8 sps:$4 sm:$0xff]   ;;  %v1086_v5 = vld [vmem:[%s1493_s2 + $0x14] ss:$8 sps:$4 sm:$0xff]  }
  0x16   : > { %564 = vmatprep.subr.bf16.mxu1 %v1072_v0  ;;  %v1088_v6 = vld [vmem:[%s1493_s2 + $0x10] ss:$8 sps:$4 sm:$0xff]   ;;  %s950_s8 = sshll.u32 %s307_s19, 6  ;;  %v1089_v7 = vld [vmem:[%s1493_s2 + $0x4] ss:$8 sps:$4 sm:$0xff]   ;;  %390 = vmatprep.subr.bf16.mxu0 %v1086_v5  ;;  %vm374_vm0 = vcmask 261120  }
  0x17   : > { %565 = vmatpush1.bf16.msra.mxu1 %v1074_v1  ;;  %s1295_s15 = scalar_lea.vmem %s1492_s1, %s950_s8  ;;  %v1091_v8 = vld [vmem:[%s1493_s2] ss:$8 sps:$4 sm:$0xff]   ;;  %391 = vmatpush1.bf16.msra.mxu0 %v1088_v6  ;;  %s949_s18 = sshll.u32 %s307_s19, 3  ;;  %v1174_v18 = vmov 0.0   ;;  %v340_v20 = vshrl.u32 %v339_v19, 7  ;;  %vm1175_vm1 = vmmov 0  }
  0x18   : > { %566 = vmatprep.subr.bf16.mxu1 %v1075_v3  ;;  %v1078_v9 = vld [vmem:[%s1295_s15] sm:$0xff]   ;;  %392 = vmatprep.subr.bf16.mxu0 %v1089_v7  ;;  %s313_s28 = scalar_lea.vmem %s1491_s0, %s949_s18  ;;  %v1079_v10 = vld [vmem:[%s1295_s15 + $0x8] sm:$0xff]   ;;  %v1080_v12 = vld [vmem:[%s1295_s15 + $0x10] sm:$0xff]   ;;  %s1446_s24 = scalar_lea.sflag [#allocation4], %s302_s12 }
  0x19   : > { %v1092_v11 = vld [vmem:[%s313_s28] sm:$0xff]   ;;  %v1081_v13 = vld [vmem:[%s1295_s15 + $0x18] sm:$0xff]   ;;  %v1083_v15 = vld [vmem:[%s1295_s15 + $0x28] sm:$0xff]   ;;  %v341_v21 = vsub.s32 0, %v340_v20  ;;  %v345_v23 = vsub.s32 1, %v340_v20  ;;  %s1176_s28 = smov [#allocation3]  }
  0x1a   : > { %v1082_v14 = vld [vmem:[%s1295_s15 + $0x20] sm:$0xff]   ;;  %v1084_v16 = vld [vmem:[%s1295_s15 + $0x30] sm:$0xff]   ;;  %v1085_v17 = vld [vmem:[%s1295_s15 + $0x38] sm:$0xff]   ;;  %s801_s15 = sshll.u32 %s304_s14, 4  ;;  %s1099_s19 = sshll.u32 %s1176_s28, 4  ;;  %s1439_s15 = int_to_ptr.vmem [resolvable:$true] %s801_s15  ;;  %s1100_s19 = int_to_ptr.vmem [resolvable:$false] %s1099_s19 }
  0x1b   : > { %567 = vmatpush1.bf16.msra.mxu1 %v1077_v4  ;;  %393 = vmatpush1.bf16.msra.mxu0 %v1091_v8  ;;  %v455_v22 = vld [vmem:[%s1496_s5] sm:$0x3]  ;;  %s1095_s27 = scalar_lea.vmem %s1439_s15, 512  ;;  %s1101_s30 = scalar_lea.vmem %s1100_s19, 1024 }
  0x1c   : > { %972 = vmatprep.subr.bf16.mxu0 %v1174_v18  ;;  %992 = vmatprep.subr.bf16.mxu1 %v1174_v18  ;;  %v337_v25 = vld [vmem:[%s1494_s3] sm:$0x3]  ;;  %v1330_v26 = vrot.slane %v455_v22, %v341_v21  ;;  %v1332_v28 = vrot.slane %v455_v22, %v345_v23  ;;  %p1096_p12 = scmp.ne.s32.totalorder %s1439_s15, %s1095_s27  ;;  %p1102_p1 = scmp.lt.s32.totalorder %s1439_s15, %s1100_s19 }
  0x1d   : > { %v342_v29 = vrot.slane %v337_v25, %v341_v21  ;;  %v346_v33 = vrot.slane %v337_v25, %v345_v23  ;;  %p1103_p2 = scmp.lt.s32.totalorder %s1101_s30, %s1095_s27 }
  0x1e   : > { %932 = vmatmul.mubr.msk.bf16.vlgmr.msra.gmra.mxu1 %vm374_vm0, %v1078_v9  ;;  %917 = vmatmul.mubr.msk.bf16.vlgmr.msra.gmra.mxu0 %vm374_vm0, %v1092_v11  ;;  %p1097_p13 = pnand %p1096_p12, %p1254_p4 }
  0x1f   : > { %594 = vmatprep.mubr.bf16.mxu1 %v1173_v2  ;;  %988 = vmatprep.mubr.msk.bf16.mxu0 %vm1175_vm1, %v1174_v18  ;;  %p1104_p3 = por %p1103_p2, %p1102_p1 }
  0x20   : > { %p1098_p0 = pneg %p1097_p13 }
  0x22   : > { %p1105_p5 = pnand %p1104_p3, %p1098_p0 }
  0x26   : > { %933 = vmatmul.mubr.msk.bf16.gmra.mxu1 %vm374_vm0, %v1079_v10 }
  0x27   : > { %604 = vmatprep.mubr.bf16.mxu1 %v1173_v2 }
  0x2e   : > { %934 = vmatmul.mubr.msk.bf16.gmra.mxu1 %vm374_vm0, %v1080_v12 }
  0x2f   : > { %614 = vmatprep.mubr.bf16.mxu1 %v1173_v2 }
  0x36   : > { %935 = vmatmul.mubr.msk.bf16.gmra.mxu1 %vm374_vm0, %v1081_v13 }
  0x37   : > { %624 = vmatprep.mubr.bf16.mxu1 %v1173_v2 }
  0x3e   : > { %936 = vmatmul.mubr.msk.bf16.gmra.mxu1 %vm374_vm0, %v1082_v14 }
  0x3f   : > { %634 = vmatprep.mubr.bf16.mxu1 %v1173_v2 }
  0x46   : > { %937 = vmatmul.mubr.msk.bf16.gmra.mxu1 %vm374_vm0, %v1083_v15 }
  0x47   : > { %644 = vmatprep.mubr.bf16.mxu1 %v1173_v2 }
  0x4e   : > { %938 = vmatmul.mubr.msk.bf16.gmra.mxu1 %vm374_vm0, %v1084_v16 }
  0x4f   : > { %654 = vmatprep.mubr.bf16.mxu1 %v1173_v2 }
  0x56   : > { %939 = vmatmul.mubr.msk.bf16.gmra.mxu1 %vm374_vm0, %v1085_v17 }
  0x57   : > { %1008 = vmatprep.mubr.msk.bf16.mxu1 %vm1175_vm1, %v1174_v18 }
  0xde   : > { %v586_v24 = vpop.f32.mrf.mxu1  ;;  %v412_v35 = vpop.f32.mrf.mxu0 }
  0xdf   : > { %v1335_v31 = vadd.f32 %v586_v24, %v1330_v26  ;;  %v413_v39 = vadd.f32 %v412_v35, %v342_v29 }
  0xe0   : > { %v588_v27 = vpop.f32.mrf.mxu1  ;;  %v414_v41 = vpop.f32.mrf.mxu0 }
  0xe1   : > { %v1341_v36 = vadd.f32 %v588_v27, %v1332_v28  ;;  %v415_v43 = vadd.f32 %v414_v41, %v346_v33 }
  0xe2   : > { %v590_v30 = vpop.f32.mrf.mxu1  ;;  %v416_v45 = vpop.f32.mrf.mxu0 }
  0xe3   : > { %v1338_v32 = vadd.f32 %v590_v30, %v1330_v26  ;;  %v951_v46 = vpack.c.bf16 %v415_v43, %v413_v39  ;;  %v417_v47 = vadd.f32 %v416_v45, %v342_v29 }
  0xe4   : > { %v592_v34 = vpop.f32.mrf.mxu1  ;;  %v418_v49 = vpop.f32.mrf.mxu0 }
  0xe5   : > { %v665_v37 = vpack.c.bf16 %v1338_v32, %v1335_v31  ;;  %v1346_v38 = vadd.f32 %v592_v34, %v1332_v28  ;;  %433 = vst [vmem:[#allocation2] sm:$0xff] %v951_v46  ;;  %v419_v52 = vadd.f32 %v418_v49, %v346_v33 }
  0xe6   : > { %v596_v40 = vpop.f32.mrf.mxu1 }
  0xe7   : > { %v666_v42 = vpack.c.bf16 %v1346_v38, %v1341_v36  ;;  %v1351_v50 = vadd.f32 %v596_v40, %v1330_v26  ;;  %v952_v57 = vpack.c.bf16 %v419_v52, %v417_v47 }
  0xe8   : > { %v598_v44 = vpop.f32.mrf.mxu1 }
  0xe9   : > { %v1357_v54 = vadd.f32 %v598_v44, %v1332_v28  ;;  %434 = vst [vmem:[#allocation2 + $0x8] sm:$0xff] %v952_v57 }
  0xea   : > { %v600_v48 = vpop.f32.mrf.mxu1 }
  0xeb   : > { %v1354_v51 = vadd.f32 %v600_v48, %v1330_v26 }
  0xec   : > { %v602_v53 = vpop.f32.mrf.mxu1 }
  0xed   : > { %v667_v55 = vpack.c.bf16 %v1354_v51, %v1351_v50  ;;  %v1362_v56 = vadd.f32 %v602_v53, %v1332_v28 }
  0xee   : > { %v606_v58 = vpop.f32.mrf.mxu1 }
  0xef   : > { %v668_v59 = vpack.c.bf16 %v1362_v56, %v1357_v54  ;;  %v1367_v62 = vadd.f32 %v606_v58, %v1330_v26 }
  0xf0   : > { %v608_v60 = vpop.f32.mrf.mxu1 }
  0xf1   : > { %v1373_v1 = vadd.f32 %v608_v60, %v1332_v28 }
  0xf2   : > { %v610_v61 = vpop.f32.mrf.mxu1 }
  0xf3   : > { %v1370_v63 = vadd.f32 %v610_v61, %v1330_v26 }
  0xf4   : > { %v612_v0 = vpop.f32.mrf.mxu1 }
  0xf5   : > { %v669_v2 = vpack.c.bf16 %v1370_v63, %v1367_v62  ;;  %v1378_v3 = vadd.f32 %v612_v0, %v1332_v28 }
  0xf6   : > { %v616_v4 = vpop.f32.mrf.mxu1 }
  0xf7   : > { %v670_v5 = vpack.c.bf16 %v1378_v3, %v1373_v1  ;;  %v1383_v8 = vadd.f32 %v616_v4, %v1330_v26 }
  0xf8   : > { %v618_v6 = vpop.f32.mrf.mxu1 }
  0xf9   : > { %v619_v11 = vadd.f32 %v618_v6, %v1332_v28 }
  0xfa   : > { %v620_v7 = vpop.f32.mrf.mxu1 }
  0xfb   : > { %v621_v9 = vadd.f32 %v620_v7, %v1330_v26 }
  0xfc   : > { %v622_v10 = vpop.f32.mrf.mxu1 }
  0xfd   : > { %v671_v12 = vpack.c.bf16 %v621_v9, %v1383_v8  ;;  %v623_v13 = vadd.f32 %v622_v10, %v1332_v28 }
  0xfe   : > { %v626_v14 = vpop.f32.mrf.mxu1 }
  0xff   : > { %v672_v15 = vpack.c.bf16 %v623_v13, %v619_v11  ;;  %v627_v7 = vadd.f32 %v626_v14, %v1330_v26 }
 0x100   : > { %v628_v16 = vpop.f32.mrf.mxu1 }
 0x101   : > { %v629_v9 = vadd.f32 %v628_v16, %v1332_v28 }
 0x102   : > { %v630_v17 = vpop.f32.mrf.mxu1 }
 0x103   : > { %v631_v6 = vadd.f32 %v630_v17, %v1330_v26 }
 0x104   : > { %v632_v19 = vpop.f32.mrf.mxu1 }
 0x105   : > { %v633_v8 = vadd.f32 %v632_v19, %v1332_v28  ;;  %v673_v10 = vpack.c.bf16 %v631_v6, %v627_v7 }
 0x106   : > { %v636_v20 = vpop.f32.mrf.mxu1 }
 0x107   : > { %v637_v58 = vadd.f32 %v636_v20, %v1330_v26  ;;  %v674_v11 = vpack.c.bf16 %v633_v8, %v629_v9 }
 0x108   : > { %v638_v21 = vpop.f32.mrf.mxu1 }
 0x109   : > { %v639_v61 = vadd.f32 %v638_v21, %v1332_v28 }
 0x10a   : > { %v640_v22 = vpop.f32.mrf.mxu1 }
 0x10b   : > { %v641_v57 = vadd.f32 %v640_v22, %v1330_v26 }
 0x10c   : > { %v642_v23 = vpop.f32.mrf.mxu1 }
 0x10d   : > { %v643_v60 = vadd.f32 %v642_v23, %v1332_v28  ;;  %v675_v0 = vpack.c.bf16 %v641_v57, %v637_v58 }
 0x10e   : > { %v646_v24 = vpop.f32.mrf.mxu1 }
 0x10f   : > { %v647_v47 = vadd.f32 %v646_v24, %v1330_v26  ;;  %v676_v4 = vpack.c.bf16 %v643_v60, %v639_v61 }
 0x110   : > { %v648_v25 = vpop.f32.mrf.mxu1 }
 0x111   : > { %v649_v49 = vadd.f32 %v648_v25, %v1332_v28 }
 0x112   : > { %v650_v27 = vpop.f32.mrf.mxu1 }
 0x113   : > { %v651_v46 = vadd.f32 %v650_v27, %v1330_v26 }
 0x114   : > { %v652_v29 = vpop.f32.mrf.mxu1 }
 0x115   : > { %v653_v48 = vadd.f32 %v652_v29, %v1332_v28  ;;  %v677_v52 = vpack.c.bf16 %v651_v46, %v647_v47 }
 0x116   : > { %v656_v30 = vpop.f32.mrf.mxu1 }
 0x117   : > { %v657_v35 = vadd.f32 %v656_v30, %v1330_v26  ;;  %v678_v53 = vpack.c.bf16 %v653_v48, %v649_v49 }
 0x118   : > { %v658_v33 = vpop.f32.mrf.mxu1 }
 0x119   : > { %v659_v41 = vadd.f32 %v658_v33, %v1332_v28 }
 0x11a   : > { %v660_v34 = vpop.f32.mrf.mxu1 }
 0x11b   : > { %v661_v39 = vadd.f32 %v660_v34, %v1330_v26  ;;  %v1093_v26 = vld [vmem:[#allocation2] ss:$8 sps:$4 sm:$0xff]  }
 0x11c   : > { %v662_v40 = vpop.f32.mrf.mxu1 }
 0x11d   : > { %v679_v43 = vpack.c.bf16 %v661_v39, %v657_v35  ;;  %v663_v44 = vadd.f32 %v662_v40, %v1332_v28  ;;  %v1094_v28 = vld [vmem:[#allocation2 + $0x4] ss:$8 sps:$4 sm:$0xff]  }
 0x11f   : > { %v680_v45 = vpack.c.bf16 %v663_v44, %v659_v41  ;;  %973 = vmatpush3.bf16.xpose.msra.mxu0 %v679_v43 }
 0x120   : > { %974 = vmatprep.subr.bf16.mxu0 %v1174_v18 }
 0x121   : > { %993 = vmatpush3.bf16.xpose.msra.mxu1 %v680_v45 }
 0x122   : > { %994 = vmatprep.subr.bf16.mxu1 %v1174_v18 }
 0x127   : > { %975 = vmatpush3.bf16.xpose.msra.mxu0 %v677_v52 }
 0x128   : > { %976 = vmatprep.subr.bf16.mxu0 %v1174_v18 }
 0x129   : > { %995 = vmatpush3.bf16.xpose.msra.mxu1 %v678_v53 }
 0x12a   : > { %996 = vmatprep.subr.bf16.mxu1 %v1174_v18 }
 0x12f   : > { %977 = vmatpush3.bf16.xpose.msra.mxu0 %v675_v0 }
 0x130   : > { %978 = vmatprep.subr.bf16.mxu0 %v1174_v18 }
 0x131   : > { %997 = vmatpush3.bf16.xpose.msra.mxu1 %v676_v4 }
 0x132   : > { %998 = vmatprep.subr.bf16.mxu1 %v1174_v18 }
 0x137   : > { %979 = vmatpush3.bf16.xpose.msra.mxu0 %v673_v10 }
 0x138   : > { %980 = vmatprep.subr.bf16.mxu0 %v1174_v18 }
 0x139   : > { %999 = vmatpush3.bf16.xpose.msra.mxu1 %v674_v11 }
 0x13a   : > { %1000 = vmatprep.subr.bf16.mxu1 %v1174_v18 }
 0x13f   : > { %981 = vmatpush3.bf16.xpose.msra.mxu0 %v671_v12 }
 0x140   : > { %982 = vmatprep.subr.bf16.mxu0 %v1174_v18 }
 0x141   : > { %1001 = vmatpush3.bf16.xpose.msra.mxu1 %v672_v15 }
 0x142   : > { %1002 = vmatprep.subr.bf16.mxu1 %v1174_v18 }
 0x147   : > { %983 = vmatpush3.bf16.xpose.msra.mxu0 %v669_v2 }
 0x148   : > { %984 = vmatprep.subr.bf16.mxu0 %v1174_v18 }
 0x149   : > { %1003 = vmatpush3.bf16.xpose.msra.mxu1 %v670_v5 }
 0x14a   : > { %1004 = vmatprep.subr.bf16.mxu1 %v1174_v18 }
 0x14f   : > { %985 = vmatpush3.bf16.xpose.msra.mxu0 %v667_v55 }
 0x150   : > { %986 = vmatprep.subr.bf16.mxu0 %v1174_v18 }
 0x151   : > { %1005 = vmatpush3.bf16.xpose.msra.mxu1 %v668_v59 }
 0x152   : > { %1006 = vmatprep.subr.bf16.mxu1 %v1174_v18 }
 0x157   : > { %987 = vmatpush3.bf16.xpose.msra.mxu0 %v665_v37 }
 0x159   : > { %1007 = vmatpush3.bf16.xpose.msra.mxu1 %v666_v42 }
 0x15e   : > { %989 = vmatmul.mubr.bf16.vlgmr.msra.gmra.mxu0 %v1093_v26 }
 0x160   : > { %1009 = vmatmul.mubr.bf16.vlgmr.msra.gmra.mxu1 %v1094_v28 }
 0x21e   : > { %v723_v50 = vpop.f32.mrf.mxu0 }
 0x21f   : > { %730 = vst [vmem:[%s304_s14] sm:$0xff] %v723_v50 }
 0x220   : > { %v990_v18 = vpop.f32.mrf.mxu0  ;;  %v774_v51 = vpop.f32.mrf.mxu1 }
 0x221   : > { %942 = vst [vmem:[%s304_s14 + $0x10] sm:$0xff] %v774_v51 }
 0x222   : > { %v726_v31 = vpop.f32.mrf.mxu0  ;;  %v1010_v32 = vpop.f32.mrf.mxu1 }
 0x223   : > { %731 = vst [vmem:[%s304_s14 + $0x8] sm:$0xff] %v726_v31 }
 0x224   : > { %v991_v36 = vpop.f32.mrf.mxu0  ;;  %v777_v37 = vpop.f32.mrf.mxu1 }
 0x225   : > { %943 = vst [vmem:[%s304_s14 + $0x18] sm:$0xff] %v777_v37 }
 0x226   : > { %v1011_v38 = vpop.f32.mrf.mxu1 }
 0x227   : > { %1108 = shalt.err (!%p1105_p5)
}
 0x228   : > { %s1109_s8 = scalar_lea.hbm %s1444_s20, 512  ;;  %s1113_s13 = scalar_lea.hbm %s1497_s6, 1024 }
 0x229   : > { %p1110_p6 = scmp.ne.s32.totalorder %s1444_s20, %s1109_s8  ;;  %p1114_p10 = scmp.lt.s32.totalorder %s1444_s20, %s1497_s6 }
 0x22a   : > { %p1115_p11 = scmp.lt.s32.totalorder %s1113_s13, %s1109_s8 }
 0x22b   : > { %p1111_p7 = pnand %p1110_p6, %p1254_p4 }
 0x22c   : > { %p1116_p12 = por %p1115_p11, %p1114_p10 }
 0x22d   : > { %p1112_p9 = pneg %p1111_p7 }
 0x22f   : > { %p1117_p13 = pnand %p1116_p12, %p1112_p9 }
 0x231   : > { %1120 = shalt.err (!%p1117_p13)
}
 0x232   : > { %s1177_s17 = smov 128   ;;  %s1178_s18 = smov 8  }
 0x233   : > { %1012 = dma.vmem_to_hbm [thread:$0]  (%p1254_p4), %s1439_s15, 512, %s1444_s20, %s1446_s24, %s1177_s17, %s1177_s17, %s1178_s18  }
 0x234 PF: > { %p1018_p0 = scmp.ge.s32.totalorder %s1171_s26, 2  ;;  %s816_s27 = sand.u32 1, %s1151_s21  }
 0x235   : > { %s817_s28 = scalar_lea.sflag [#allocation4], %s816_s27 }
 0x236   : > { %p1015_p1 = pnand %p1018_p0, %p1261_p8 }
 0x238   : > { %p1016_p2 = pneg %p1015_p1 }
 0x23a   : > { %1146 = dma.done.wait (%p1016_p2), %s817_s28, 512  }
 0x23b   : > { %1148 = vsyncadd (%p1016_p2), %s817_s28, 4294966784  ;;  %s19_s26 = sadd.s32 1, %s1171_s26   ;;  %s1500_s21 = smov %s1155_s22 }
 0x23c   : > { %p16_p3 = scmp.ge.s32.totalorder %s19_s26, 4   ;;  %s1501_s22 = smov %s1159_s23 }
 0x23d   : > { %s1502_s23 = smov %s1267_s10  ;;  %s1503_s24 = smov %s1167_s25 }
 0x23e   : > { %s1504_s25 = smov %s1506_s29  ;;  %18 = sbr.rel (!%p16_p3) target bundleno = 4 (0x4), region = 87 }
 0x243   :  { %822 = vsyncpa [#allocation4], 1 }
 0x244   :  { %824 = vsyncpa [#allocation4 + $0x1], 1 }

</bundles_post_ra>
